<compile_context>
chip_gen: v7x
topology: tpu7x:2x2x1
jax: 0.10.0
libtpu: 0.0.40
codegen_flags: <defaults>
</compile_context>

<pallas_src>
import functools
import math

import jax
import jax.numpy as jnp
from jax.experimental import pallas as pl
from jax.experimental.pallas import tpu as pltpu


def _round_up(x, m):
    return ((x + m - 1) // m) * m


def _tile(dim, pref):
    """Return (tile, padded_dim). Full-dim block if small, else aligned tile + pad."""
    if dim <= pref:
        return dim, dim
    return pref, _round_up(dim, pref)


# --------------------------------------------------------------------------
# Tiled matmul: C = A @ B   (fp32 accumulation on the MXU)
# --------------------------------------------------------------------------
def _matmul_kernel(a_ref, b_ref, o_ref, acc_ref):
    @pl.when(pl.program_id(2) == 0)
    def _():
        acc_ref[...] = jnp.zeros_like(acc_ref)

    acc_ref[...] += jnp.dot(a_ref[...], b_ref[...],
                            preferred_element_type=jnp.float32)

    @pl.when(pl.program_id(2) == pl.num_programs(2) - 1)
    def _():
        o_ref[...] = acc_ref[...].astype(o_ref.dtype)


def matmul(a, b, *, tm=256, tn=256, tk=512, out_dtype=None):
    """a: (M, K), b: (K, N) -> (M, N)."""
    M, K = a.shape
    K2, N = b.shape
    assert K == K2, (a.shape, b.shape)
    out_dtype = out_dtype or a.dtype

    tm_, Mp = _tile(M, tm)
    tn_, Np = _tile(N, tn)
    tk_, Kp = _tile(K, tk)

    if (Mp, Kp) != (M, K):
        a = jnp.pad(a, ((0, Mp - M), (0, Kp - K)))
    if (Kp, Np) != (K, N):
        b = jnp.pad(b, ((0, Kp - K), (0, Np - N)))

    out = pl.pallas_call(
        _matmul_kernel,
        out_shape=jax.ShapeDtypeStruct((Mp, Np), out_dtype),
        grid_spec=pltpu.PrefetchScalarGridSpec(
            num_scalar_prefetch=0,
            grid=(Mp // tm_, Np // tn_, Kp // tk_),
            in_specs=[
                pl.BlockSpec((tm_, tk_), lambda i, j, k: (i, k)),
                pl.BlockSpec((tk_, tn_), lambda i, j, k: (k, j)),
            ],
            out_specs=pl.BlockSpec((tm_, tn_), lambda i, j, k: (i, j)),
            scratch_shapes=[pltpu.VMEM((tm_, tn_), jnp.float32)],
        ),
        compiler_params=pltpu.CompilerParams(
            dimension_semantics=("parallel", "parallel", "arbitrary"),
            vmem_limit_bytes=48 * 1024 * 1024,
        ),
    )(a, b)

    if (Mp, Np) != (M, N):
        out = out[:M, :N]
    return out


# --------------------------------------------------------------------------
# Attention: softmax(Q K^T * scale + mask) @ V   (online softmax over KV tiles)
# --------------------------------------------------------------------------
def _attn_kernel(q_ref, k_ref, v_ref, mask_ref, o_ref,
                 m_sc, l_sc, acc_sc, *, sm_scale):
    ki = pl.program_id(2)

    @pl.when(ki == 0)
    def _():
        m_sc[...] = jnp.full_like(m_sc, -1e30)   # finite: avoids inf-inf NaN
        l_sc[...] = jnp.zeros_like(l_sc)
        acc_sc[...] = jnp.zeros_like(acc_sc)

    q = q_ref[...].astype(jnp.float32)
    k = k_ref[...].astype(jnp.float32)
    v = v_ref[...].astype(jnp.float32)

    # s[tq, tkv] = q @ k^T  (contract the head_dim axis of both, no explicit transpose)
    s = jax.lax.dot_general(q, k, (((1,), (1,)), ((), ())),
                            preferred_element_type=jnp.float32)
    s = s * sm_scale + mask_ref[...].astype(jnp.float32)

    m_prev = m_sc[...]
    m_new = jnp.maximum(m_prev, s.max(axis=-1, keepdims=True))
    alpha = jnp.exp(m_prev - m_new)
    p = jnp.exp(s - m_new)

    l_sc[...] = alpha * l_sc[...] + p.sum(axis=-1, keepdims=True)
    acc_sc[...] = alpha * acc_sc[...] + jnp.dot(
        p, v, preferred_element_type=jnp.float32)
    m_sc[...] = m_new

    @pl.when(ki == pl.num_programs(2) - 1)
    def _():
        o_ref[...] = (acc_sc[...] *
                      pl.reciprocal(l_sc[...], approx=False)).astype(o_ref.dtype)


def attention(q, k, v, mask, *, sm_scale, tq=256, tkv=256):
    """q, k, v: (BH, S, Dh); mask: (BH, S, S) additive logit mask."""
    BH, S, Dh = q.shape

    tq_, Sqp = _tile(S, tq)
    tkv_, Skp = _tile(S, tkv)

    if Sqp != S:
        q = jnp.pad(q, ((0, 0), (0, Sqp - S), (0, 0)))
    if Skp != S:
        k = jnp.pad(k, ((0, 0), (0, Skp - S), (0, 0)))
        v = jnp.pad(v, ((0, 0), (0, Skp - S), (0, 0)))
    if (Sqp, Skp) != (S, S):
        # Padded KV positions get a huge negative bias so they contribute ~0.
        mask = jnp.pad(mask, ((0, 0), (0, Sqp - S), (0, Skp - S)),
                       constant_values=-1e30)

    kernel = functools.partial(_attn_kernel, sm_scale=sm_scale)

    out = pl.pallas_call(
        kernel,
        out_shape=jax.ShapeDtypeStruct((BH, Sqp, Dh), q.dtype),
        grid_spec=pltpu.PrefetchScalarGridSpec(
            num_scalar_prefetch=0,
            grid=(BH, Sqp // tq_, Skp // tkv_),
            in_specs=[
                pl.BlockSpec((None, tq_, Dh), lambda b, i, j: (b, i, 0)),
                pl.BlockSpec((None, tkv_, Dh), lambda b, i, j: (b, j, 0)),
                pl.BlockSpec((None, tkv_, Dh), lambda b, i, j: (b, j, 0)),
                pl.BlockSpec((None, tq_, tkv_), lambda b, i, j: (b, i, j)),
            ],
            out_specs=pl.BlockSpec((None, tq_, Dh), lambda b, i, j: (b, i, 0)),
            scratch_shapes=[
                pltpu.VMEM((tq_, 1), jnp.float32),   # running max
                pltpu.VMEM((tq_, 1), jnp.float32),   # running denom
                pltpu.VMEM((tq_, Dh), jnp.float32),  # output accumulator
            ],
        ),
        compiler_params=pltpu.CompilerParams(
            dimension_semantics=("parallel", "parallel", "arbitrary"),
            vmem_limit_bytes=48 * 1024 * 1024,
        ),
    )(q, k, v, mask)

    if Sqp != S:
        out = out[:, :S, :]
    return out


# --------------------------------------------------------------------------
# Full BaichuanAttention forward
# --------------------------------------------------------------------------
def baichuan_attention(hidden_states, attention_mask, w_pack, w_o, *, num_heads):
    """hidden_states: (B, S, H); attention_mask broadcastable to (B, nh, S, S);
    w_pack: (3H, H) and w_o: (H, H) in PyTorch (out, in) layout."""
    B, S, H = hidden_states.shape
    head_dim = H // num_heads
    assert head_dim * num_heads == H
    sm_scale = 1.0 / math.sqrt(head_dim)

    # W_pack projection.
    x2d = hidden_states.reshape(B * S, H)
    proj = matmul(x2d, w_pack.T, out_dtype=hidden_states.dtype)      # (B*S, 3H)

    # Split into Q/K/V and move heads into the batch axis (layout only).
    proj = proj.reshape(B, S, 3, num_heads, head_dim)
    q = proj[:, :, 0].transpose(0, 2, 1, 3).reshape(B * num_heads, S, head_dim)
    k = proj[:, :, 1].transpose(0, 2, 1, 3).reshape(B * num_heads, S, head_dim)
    v = proj[:, :, 2].transpose(0, 2, 1, 3).reshape(B * num_heads, S, head_dim)

    mask = jnp.broadcast_to(attention_mask.astype(jnp.float32),
                            (B, num_heads, S, S)).reshape(B * num_heads, S, S)

    attn = attention(q, k, v, mask, sm_scale=sm_scale)               # (B*nh, S, dh)

    attn = attn.reshape(B, num_heads, S, head_dim).transpose(0, 2, 1, 3)
    attn = attn.reshape(B * S, H)

    out = matmul(attn, w_o.T, out_dtype=hidden_states.dtype)         # (B*S, H)
    return out.reshape(B, S, H)


# --------------------------------------------------------------------------
# Pure-JAX reference (mirrors the PyTorch module)
# --------------------------------------------------------------------------
def baichuan_attention_reference(hidden_states, attention_mask, w_pack, w_o, *, num_heads):
    B, S, H = hidden_states.shape
    dh = H // num_heads
    proj = hidden_states @ w_pack.T
    proj = proj.reshape(B, S, 3, num_heads, dh)
    q = proj[:, :, 0].transpose(0, 2, 1, 3)
    k = proj[:, :, 1].transpose(0, 2, 1, 3)
    v = proj[:, :, 2].transpose(0, 2, 1, 3)
    attn_w = jnp.einsum("bhqd,bhkd->bhqk", q, k) / math.sqrt(dh)
    attn_w = attn_w + attention_mask
    attn_w = jax.nn.softmax(attn_w, axis=-1)
    attn_out = jnp.einsum("bhqk,bhkd->bhqd", attn_w, v)
    attn_out = attn_out.transpose(0, 2, 1, 3).reshape(B, S, H)
    return attn_out @ w_o.T


if __name__ == "__main__":
    # Small shapes consistent with the module: batch=2, seq=8, hidden=32, heads=4.
    batch, seq, hidden, num_heads = 2, 8, 32, 4

    key = jax.random.PRNGKey(0)
    k1, k2, k3 = jax.random.split(key, 3)
    x = jax.random.normal(k1, (batch, seq, hidden), dtype=jnp.float32)
    w_pack = 0.02 * jax.random.normal(k2, (3 * hidden, hidden), dtype=jnp.float32)
    w_o = 0.02 * jax.random.normal(k3, (hidden, hidden), dtype=jnp.float32)

    # Standard additive causal mask (finite large-negative, as Baichuan builds it).
    causal = jnp.tril(jnp.ones((seq, seq), dtype=bool))
    attention_mask = jnp.where(causal, 0.0, -1e9).astype(jnp.float32)[None, None]

    out = baichuan_attention(x, attention_mask, w_pack, w_o, num_heads=num_heads)
    out = jax.block_until_ready(out)

    ref = baichuan_attention_reference(x, attention_mask, w_pack, w_o,
                                       num_heads=num_heads)
    assert out.shape == ref.shape, (out.shape, ref.shape)
    assert jnp.allclose(out, ref, atol=1e-4, rtol=1e-4), \
        float(jnp.max(jnp.abs(out - ref)))

    print("KERNEL_OK")
</pallas_src>

<mosaic_0001>
module attributes {stable_mosaic.version = 11 : i64} {
  func.func @_matmul_kernel(%arg0: i32, %arg1: i32, %arg2: i32, %arg3: memref<16x32xf32, #tpu.memory_space<vmem>>, %arg4: memref<32x96xf32, #tpu.memory_space<vmem>>, %arg5: memref<16x96xf32, #tpu.memory_space<vmem>>, %arg6: memref<16x96xf32, #tpu.memory_space<vmem>>) attributes {dimension_semantics = [#tpu.dimension_semantics<parallel>, #tpu.dimension_semantics<parallel>, #tpu.dimension_semantics<arbitrary>], iteration_bounds = array<i64: 1, 1, 1>, scalar_prefetch = 0 : i64, scratch_operands = 1 : i64, tpu.core_type = #tpu.core_type<tc>, window_params = [{transform_indices = @transform_0, window_bounds = array<i64: 16, 32>}, {transform_indices = @transform_1, window_bounds = array<i64: 32, 96>}, {transform_indices = @transform_2, window_bounds = array<i64: 16, 96>}]} {
    %c0_i32 = arith.constant 0 : i32
    %0 = arith.cmpi eq, %arg2, %c0_i32 : i32
    %1 = arith.extui %0 : i1 to i32
    %c0_i32_0 = arith.constant 0 : i32
    %2 = arith.cmpi ne, %1, %c0_i32_0 : i32
    scf.if %2 {
      %cst_10 = arith.constant 0.000000e+00 : f32
      %12 = vector.broadcast %cst_10 : f32 to vector<16x96xf32>
      %c0_11 = arith.constant 0 : index
      %c0_12 = arith.constant 0 : index
      %13 = vector.load %arg6[%c0_11, %c0_12] : memref<16x96xf32, #tpu.memory_space<vmem>>, vector<16x96xf32>
      tpu.vector_store %arg6[%c0_11, %c0_12], %12 {strides = array<i32>} : memref<16x96xf32, #tpu.memory_space<vmem>>, vector<16x96xf32>,
    } else {
    }
    %c0 = arith.constant 0 : index
    %c0_1 = arith.constant 0 : index
    %3 = vector.load %arg6[%c0, %c0_1] : memref<16x96xf32, #tpu.memory_space<vmem>>, vector<16x96xf32>
    %c0_2 = arith.constant 0 : index
    %c0_3 = arith.constant 0 : index
    %4 = vector.load %arg3[%c0_2, %c0_3] : memref<16x32xf32, #tpu.memory_space<vmem>>, vector<16x32xf32>
    %c0_4 = arith.constant 0 : index
    %c0_5 = arith.constant 0 : index
    %5 = vector.load %arg4[%c0_4, %c0_5] : memref<32x96xf32, #tpu.memory_space<vmem>>, vector<32x96xf32>
    %cst = arith.constant dense<0.000000e+00> : vector<16x96xf32>
    %6 = tpu.matmul %4, %5, %cst {dimension_numbers = #tpu.dot_dimension_numbers<[1], [0], [0], [1], [0, 0, 1, 1], [], []>} : vector<16x32xf32>, vector<32x96xf32>, vector<16x96xf32> -> vector<16x96xf32>
    %7 = arith.addf %3, %6 : vector<16x96xf32>
    %c0_6 = arith.constant 0 : index
    %c0_7 = arith.constant 0 : index
    %8 = vector.load %arg6[%c0_6, %c0_7] : memref<16x96xf32, #tpu.memory_space<vmem>>, vector<16x96xf32>
    tpu.vector_store %arg6[%c0_6, %c0_7], %7 {strides = array<i32>} : memref<16x96xf32, #tpu.memory_space<vmem>>, vector<16x96xf32>,
    %c0_i32_8 = arith.constant 0 : i32
    %9 = arith.cmpi eq, %arg2, %c0_i32_8 : i32
    %10 = arith.extui %9 : i1 to i32
    %c0_i32_9 = arith.constant 0 : i32
    %11 = arith.cmpi ne, %10, %c0_i32_9 : i32
    scf.if %11 {
      %c0_10 = arith.constant 0 : index
      %c0_11 = arith.constant 0 : index
      %12 = vector.load %arg6[%c0_10, %c0_11] : memref<16x96xf32, #tpu.memory_space<vmem>>, vector<16x96xf32>
      %c0_12 = arith.constant 0 : index
      %c0_13 = arith.constant 0 : index
      %13 = vector.load %arg5[%c0_12, %c0_13] : memref<16x96xf32, #tpu.memory_space<vmem>>, vector<16x96xf32>
      tpu.vector_store %arg5[%c0_12, %c0_13], %12 {strides = array<i32>} : memref<16x96xf32, #tpu.memory_space<vmem>>, vector<16x96xf32>,
    } else {
    }
    return
  }
  func.func @transform_0(%arg0: i32, %arg1: i32, %arg2: i32) -> (i32, i32) {
    %c0_i32 = arith.constant 0 : i32
    return %arg0, %arg2 : i32, i32
  }
  func.func @transform_1(%arg0: i32, %arg1: i32, %arg2: i32) -> (i32, i32) {
    %c0_i32 = arith.constant 0 : i32
    return %arg2, %arg1 : i32, i32
  }
  func.func @transform_2(%arg0: i32, %arg1: i32, %arg2: i32) -> (i32, i32) {
    %c0_i32 = arith.constant 0 : i32
    return %arg0, %arg1 : i32, i32
  }
}

</mosaic_0001>

<bundles_post_ra>
// kernel: tpu_custom_call.1
= control target key start
LH: loop header
LB: loop body
LE: loop exit
PB: predicated region body
PF: predicated region fallthrough
CT: control target
= control target key end

     0   :  { %7 = vsyncpa [#allocation4], 0  ;;  %s344_s0 = inlined_call_operand.hbm [shape: f32[16,32], index: 0, kind: input, shape index: {}]   ;;  %s345_s1 = inlined_call_operand.hbm [shape: f32[32,96], index: 1, kind: input, shape index: {}]   ;;  %s346_s2 = inlined_call_operand.hbm [shape: f32[16,96], index: 2, kind: output, shape index: {}]  }
   0x1   :  { %8 = vsyncpa [#allocation7], 0 }
   0x2   :  { %9 = vsyncpa [#allocation5], 0  ;;  %s272_s9 = smov [#allocation3]   ;;  %s200_s13 = scalar_lea.hbm %s344_s0, 256 }
   0x3   :  { %s15_s10 = sshll.u32 %s272_s9, 4  ;;  %p201_p0 = scmp.ne.s32.totalorder %s344_s0, %s200_s13  ;;  %s16_s10 = int_to_ptr.vmem [resolvable:$true] %s15_s10 }
   0x4   :  { %p204_p1 = scmp.lt.u32.totalorder %s200_s13, %s344_s0 }
   0x6   :  { %p206_p2 = pnand %p204_p1, %p201_p0 }
   0x8   :  { %209 = shalt.err (!%p206_p2)
}
   0x9   :  { %s210_s18 = scalar_lea.vmem %s16_s10, 256  ;;  %p215_p4 = scmp.lt.s32.totalorder %s16_s10, %s16_s10 }
   0xa   :  { %p211_p3 = scmp.ne.s32.totalorder %s16_s10, %s210_s18  ;;  %p216_p5 = scmp.lt.s32.totalorder %s210_s18, %s210_s18 }
   0xc   :  { %p217_p6 = por %p216_p5, %p215_p4 }
   0xe   :  { %p218_p7 = pnand %p217_p6, %p211_p3 }
  0x10   :  { %221 = shalt.err (!%p218_p7)
}
  0x11   :  { %s273_s19 = smov 128   ;;  %s274_s20 = smov 8  }
  0x12   :  { %21 = dma.hbm_to_vmem [thread:$0]  %s344_s0, 256, %s16_s10, [#allocation4], %s273_s19, %s273_s19, %s274_s20  }
  0x13   :  { %s275_s23 = smov [#allocation6]   ;;  %s222_s27 = scalar_lea.hbm %s345_s1, 512 }
  0x14   :  { %s27_s24 = sshll.u32 %s275_s23, 4  ;;  %p223_p8 = scmp.ne.s32.totalorder %s345_s1, %s222_s27  ;;  %s28_s24 = int_to_ptr.vmem [resolvable:$true] %s27_s24 }
  0x15   :  { %p226_p9 = scmp.lt.u32.totalorder %s222_s27, %s345_s1 }
  0x17   :  { %p228_p10 = pnand %p226_p9, %p223_p8 }
  0x19   :  { %231 = shalt.err (!%p228_p10)
}
  0x1a   :  { %s232_s4 = scalar_lea.vmem %s28_s24, 512  ;;  %p237_p12 = scmp.lt.s32.totalorder %s28_s24, %s28_s24 }
  0x1b   :  { %p233_p11 = scmp.ne.s32.totalorder %s28_s24, %s232_s4  ;;  %p238_p13 = scmp.lt.s32.totalorder %s232_s4, %s232_s4 }
  0x1d   :  { %p239_p0 = por %p238_p13, %p237_p12 }
  0x1f   :  { %p240_p1 = pnand %p239_p0, %p233_p11 }
  0x21   :  { %243 = shalt.err (!%p240_p1)
}
  0x22   :  { %33 = dma.hbm_to_vmem [thread:$0]  %s345_s1, 512, %s28_s24, [#allocation7], %s273_s19, %s273_s19, %s274_s20  }
  0x23   :  { %266 = dma.done.wait [#allocation4], 256  }
  0x24   :  { %267 = vsyncadd [#allocation4], 4294967040 }
  0x25   :  { %268 = dma.done.wait [#allocation7], 512  }
  0x26   :  { %269 = vsyncadd [#allocation7], 4294966784  ;;  %vm44_vm0 = vcmask 785408   ;;  %v276_v0 = vmov 0.0   ;;  %vm55_vm1 = vcmask 261120   ;;  %v51_v1 = vld [vmem:[#allocation6] sm:$0xff] }
  0x27   :  { %46 = vst.msk [vmem:[#allocation2 + $0x8] sm:$0xff] %vm44_vm0, %v276_v0  ;;  %45 = vst.msk [vmem:[#allocation2] sm:$0xff] %vm44_vm0, %v276_v0  ;;  %v52_v2 = vld [vmem:[#allocation6 + $0x8] sm:$0xff]  ;;  %v53_v3 = vld [vmem:[#allocation6 + $0x10] sm:$0xff]  ;;  %s277_s1 = smov [#allocation8]  }
  0x28   :  { %v186_v4 = vpack.c.bf16 %v52_v2, %v51_v1  ;;  %v54_v5 = vld [vmem:[#allocation6 + $0x18] sm:$0xff]  ;;  %v49_v6 = vld [vmem:[#allocation3] sm:$0xff]  ;;  %s154_s6 = sshll.u32 %s277_s1, 4  ;;  %s155_s6 = int_to_ptr.vmem [resolvable:$true] %s154_s6 }
  0x29   :  { %v190_v7 = vpack.c.bf16 %v54_v5, %v53_v3  ;;  %183 = vmatprep.mubr.msk.f32.mxu0 %vm55_vm1, %v49_v6  ;;  %v50_v8 = vld [vmem:[#allocation3 + $0x8] sm:$0xff]  ;;  %s244_s7 = scalar_lea.vmem %s155_s6, 256  ;;  %p249_p3 = scmp.lt.s32.totalorder %s155_s6, %s155_s6 }
  0x2a   :  { %187 = vmatprep.subr.bf16.mxu0 %v186_v4  ;;  %p245_p2 = scmp.ne.s32.totalorder %s155_s6, %s244_s7  ;;  %p250_p4 = scmp.lt.s32.totalorder %s244_s7, %s244_s7 }
  0x2b   :  { %189 = vmatpush3.bf16.msra.mxu0 %v186_v4 }
  0x2c   :  { %191 = vmatprep.subr.bf16.mxu0 %v190_v7  ;;  %p251_p5 = por %p250_p4, %p249_p3 }
  0x2e   :  { %v48_v9 = vld [vmem:[#allocation2 + $0x8] sm:$0xff]  ;;  %v47_v10 = vld [vmem:[#allocation2] sm:$0xff]  ;;  %p252_p6 = pnand %p251_p5, %p245_p2 }
  0x2f   :  { %193 = vmatpush3.bf16.msra.mxu0 %v190_v7 }
  0x32   :  { %184 = vmatmul.mubr.msk.f32.vlgmr.msra.gmra.mrb[0].mxu0 %vm55_vm1, %v50_v8 }
 0x105   :  { %v185_v11 = vpop.f32.mrb[0].mxu0 }
 0x106   :  { %v138_v12 = vadd.f32 %v185_v11, %v48_v9  ;;  %v128_v13 = vpop.f32.mrb[1].mxu0 }
 0x107   :  { %v137_v14 = vadd.f32 %v128_v13, %v47_v10 }
 0x108   :  { %141 = vst.msk [vmem:[#allocation2 + $0x8] sm:$0xff] %vm44_vm0, %v138_v12 }
 0x109   :  { %140 = vst.msk [vmem:[#allocation2] sm:$0xff] %vm44_vm0, %v137_v14 }
 0x10f   :  { %v146_v15 = vld [vmem:[#allocation2 + $0x8] sm:$0xff] }
 0x110   :  { %v145_v16 = vld [vmem:[#allocation2] sm:$0xff]  ;;  %148 = vst.msk [vmem:[#allocation8 + $0x8] sm:$0xff] %vm44_vm0, %v146_v15 }
 0x111   :  { %147 = vst.msk [vmem:[#allocation8] sm:$0xff] %vm44_vm0, %v145_v16 }
 0x112   :  { %255 = shalt.err (!%p252_p6)
}
 0x113   :  { %s256_s10 = scalar_lea.hbm %s346_s2, 256 }
 0x114   :  { %p257_p7 = scmp.ne.s32.totalorder %s346_s2, %s256_s10  ;;  %p260_p8 = scmp.lt.u32.totalorder %s256_s10, %s346_s2 }
 0x116   :  { %p262_p9 = pnand %p260_p8, %p257_p7 }
 0x118   :  { %265 = shalt.err (!%p262_p9)
}
 0x119   :  { %160 = dma.vmem_to_hbm [thread:$0]  %s155_s6, 256, %s346_s2, [#allocation5], %s273_s19, %s273_s19, %s274_s20  }
 0x11a   :  { %270 = dma.done.wait [#allocation5], 256  }
 0x11b   :  { %271 = vsyncadd [#allocation5], 4294967040 }
 0x11c   :  { %164 = vsyncpa [#allocation4], 1 }
 0x11d   :  { %165 = vsyncpa [#allocation7], 1 }
 0x11e   :  { %166 = vsyncpa [#allocation5], 1 }

</bundles_post_ra>
